<compile_context>
chip_gen: v7x
topology: tpu7x:2x2x1
jax: 0.10.0
libtpu: 0.0.40
codegen_flags: <defaults>
</compile_context>

<pallas_src>
import jax
import jax.numpy as jnp
from jax.experimental import pallas as pl
from jax.experimental.pallas import tpu as pltpu

# ---- small synthetic config (what the forward implies) ----------------------
B = 2                         # batch
C = 3                         # image channels
IMG = 16                      # image height / width
PATCH = 4                     # conv1 kernel == stride (patch size)
GRID = IMG // PATCH           # 4
N_PATCH = GRID * GRID         # 16
SEQ = N_PATCH + 1             # 17 = CLS token + patches
D = 32                        # visual width (ctx_dim = visual.ln_pre.weight.shape[0])
K = C * PATCH * PATCH         # 48 flattened patch length
N_PRO = 4                     # cfg.TRAINER.META.N_PRO
LAYER_P = 2                   # cfg.TRAINER.META.LAYERS


def vision_prompt_kernel(patches_ref, w_ref, cls_ref, pos_ref, o_ref):
    """patches_ref: [B, SEQ, K]  (row 0 of each batch element is zeros = CLS slot)
       w_ref:       [K, D]       conv1 weight reshaped for x @ W
       cls_ref:     [1, D]       class_embedding
       pos_ref:     [SEQ, D]     positional_embedding
       o_ref:       [B, SEQ, D]
    """
    b, seq, d = o_ref.shape
    k = w_ref.shape[0]

    # Patch-embedding conv (stride == kernel) as one batched MXU matmul.
    w_b = jnp.broadcast_to(w_ref[...][None], (b, k, d))
    emb = jnp.einsum("bsk,bkd->bsd", patches_ref[...], w_b,
                     preferred_element_type=jnp.float32)          # [B, SEQ, D]

    # Class token: CLS rows of the matmul are zero; add class_embedding there.
    row = jax.lax.broadcasted_iota(jnp.int32, (b, seq, d), dimension=1)
    cls_b = jnp.broadcast_to(cls_ref[...][None], (b, seq, d))
    x = emb + jnp.where(row == 0, cls_b, 0.0)

    # Positional embedding, then one full-slab store.
    o_ref[...] = x + pos_ref[...][None]


def _full_spec(shape):
    nd = len(shape)
    return pl.BlockSpec(shape, lambda i, _nd=nd: (0,) * _nd)


def vision_prompt_learner_forward(x, ctx, conv1_w, class_emb, pos_emb):
    """x: [B, C, IMG, IMG] float32.  ctx: [LAYER_P, N_PRO, D] (or 4-D already).
       conv1_w: [D, C, PATCH, PATCH] (torch conv layout).
       class_emb: [D].  pos_emb: [SEQ, D].
       Returns (x_embed [B, SEQ, D], ctx [B, LAYER_P, N_PRO, D])."""
    b = x.shape[0]

    # --- layout plumbing (zero compute), kept in the wrapper -----------------
    # im2col for a stride==kernel conv: [B, C, H, W] -> [B, N_PATCH, C*P*P]
    p = x.reshape(b, C, GRID, PATCH, GRID, PATCH)
    p = p.transpose(0, 2, 4, 1, 3, 5).reshape(b, N_PATCH, K)
    # Prepend a zero "CLS patch" so the in-kernel matmul emits all SEQ rows
    # (0 @ W == 0; the class embedding itself is added inside the kernel).
    patches_full = jnp.concatenate(
        [jnp.zeros((b, 1, K), jnp.float32), p], axis=1)           # [B, SEQ, K]
    # conv weight -> [K, D] slab for x @ W (matches (c, ph, pw) patch order).
    w = conv1_w.reshape(D, K).T
    cls2d = class_emb.reshape(1, D)

    x_out = pl.pallas_call(
        vision_prompt_kernel,
        out_shape=jax.ShapeDtypeStruct((b, SEQ, D), jnp.float32),
        grid=(1,),
        in_specs=[_full_spec(patches_full.shape),
                  _full_spec(w.shape),
                  _full_spec(cls2d.shape),
                  _full_spec(pos_emb.shape)],
        out_specs=pl.BlockSpec((b, SEQ, D), lambda i: (0, 0, 0)),
        compiler_params=pltpu.CompilerParams(
            dimension_semantics=("arbitrary",)),
    )(patches_full, w, cls2d, pos_emb)

    # ctx.unsqueeze(0).expand(len(x), ...): pure broadcast view, no kernel needed.
    if ctx.ndim == 3:
        ctx = jnp.broadcast_to(ctx[None], (b,) + ctx.shape)
    return x_out, ctx


if __name__ == "__main__":
    key = jax.random.PRNGKey(0)
    kx, kw, kc, kp, kctx = jax.random.split(key, 5)

    x = jax.random.normal(kx, (B, C, IMG, IMG), jnp.float32)
    conv1_w = 0.02 * jax.random.normal(kw, (D, C, PATCH, PATCH), jnp.float32)
    class_emb = 0.02 * jax.random.normal(kc, (D,), jnp.float32)
    pos_emb = 0.02 * jax.random.normal(kp, (SEQ, D), jnp.float32)
    ctx = 0.02 * jax.random.normal(kctx, (LAYER_P, N_PRO, D), jnp.float32)

    out_x, out_ctx = vision_prompt_learner_forward(x, ctx, conv1_w,
                                                   class_emb, pos_emb)
    out_x = jax.block_until_ready(out_x)
    out_ctx = jax.block_until_ready(out_ctx)

    assert out_x.shape == (B, SEQ, D) and out_x.dtype == jnp.float32
    assert out_ctx.shape == (B, LAYER_P, N_PRO, D)
    assert bool(jnp.all(jnp.isfinite(out_x)))
    print("KERNEL_OK")
</pallas_src>

<mosaic_0001>
module attributes {stable_mosaic.version = 11 : i64} {
  func.func @vision_prompt_kernel(%arg0: i32, %arg1: memref<2x17x48xf32, #tpu.memory_space<vmem>>, %arg2: memref<48x32xf32, #tpu.memory_space<vmem>>, %arg3: memref<1x32xf32, #tpu.memory_space<vmem>>, %arg4: memref<17x32xf32, #tpu.memory_space<vmem>>, %arg5: memref<2x17x32xf32, #tpu.memory_space<vmem>>) attributes {dimension_semantics = [#tpu.dimension_semantics<arbitrary>], iteration_bounds = array<i64: 1>, scalar_prefetch = 0 : i64, scratch_operands = 0 : i64, tpu.core_type = #tpu.core_type<tc>, window_params = [{pipeline_mode = #tpu.pipeline_mode<synchronous>, transform_indices = @transform_0, window_bounds = array<i64: 2, 17, 48>}, {pipeline_mode = #tpu.pipeline_mode<synchronous>, transform_indices = @transform_1, window_bounds = array<i64: 48, 32>}, {pipeline_mode = #tpu.pipeline_mode<synchronous>, transform_indices = @transform_2, window_bounds = array<i64: 1, 32>}, {pipeline_mode = #tpu.pipeline_mode<synchronous>, transform_indices = @transform_3, window_bounds = array<i64: 17, 32>}, {pipeline_mode = #tpu.pipeline_mode<synchronous>, transform_indices = @transform_4, window_bounds = array<i64: 2, 17, 32>}]} {
    %c0 = arith.constant 0 : index
    %c0_0 = arith.constant 0 : index
    %0 = vector.load %arg2[%c0, %c0_0] : memref<48x32xf32, #tpu.memory_space<vmem>>, vector<48x32xf32>
    %1 = vector.shape_cast %0 : vector<48x32xf32> to vector<1x48x32xf32>
    %2 = vector.shape_cast %1 : vector<1x48x32xf32> to vector<1x48x32xf32>
    %3 = vector.broadcast %2 : vector<1x48x32xf32> to vector<2x48x32xf32>
    %c0_1 = arith.constant 0 : index
    %c0_2 = arith.constant 0 : index
    %c0_3 = arith.constant 0 : index
    %4 = vector.load %arg1[%c0_1, %c0_2, %c0_3] : memref<2x17x48xf32, #tpu.memory_space<vmem>>, vector<2x17x48xf32>
    "tpu.trace_start"() <{level = 10 : i32, message = "bsk,bkd->bsd"}> : () -> ()
    %cst = arith.constant dense<0.000000e+00> : vector<2x17x32xf32>
    %5 = tpu.matmul %4, %3, %cst {dimension_numbers = #tpu.dot_dimension_numbers<[2], [1], [1], [2], [0, 0, 0, 1, 1, 2], [0], [0]>} : vector<2x17x48xf32>, vector<2x48x32xf32>, vector<2x17x32xf32> -> vector<2x17x32xf32>
    "tpu.trace_stop"() : () -> ()
    %6 = tpu.iota {dimensions = array<i32: 1>} : vector<2x17x32xi32>
    %c0_4 = arith.constant 0 : index
    %c0_5 = arith.constant 0 : index
    %7 = vector.load %arg3[%c0_4, %c0_5] : memref<1x32xf32, #tpu.memory_space<vmem>>, vector<1x32xf32>
    %8 = vector.shape_cast %7 : vector<1x32xf32> to vector<1x1x32xf32>
    %9 = vector.shape_cast %8 : vector<1x1x32xf32> to vector<1x1x32xf32>
    %10 = vector.broadcast %9 : vector<1x1x32xf32> to vector<2x17x32xf32>
    %c0_i32 = arith.constant 0 : i32
    %11 = vector.broadcast %c0_i32 : i32 to vector<2x17x32xi32>
    %12 = arith.cmpi eq, %6, %11 : vector<2x17x32xi32>
    %cst_6 = arith.constant 0.000000e+00 : f32
    %13 = vector.broadcast %cst_6 : f32 to vector<2x17x32xf32>
    %14 = arith.select %12, %10, %13 : vector<2x17x32xi1>, vector<2x17x32xf32>
    %15 = arith.addf %5, %14 : vector<2x17x32xf32>
    %c0_7 = arith.constant 0 : index
    %c0_8 = arith.constant 0 : index
    %16 = vector.load %arg4[%c0_7, %c0_8] : memref<17x32xf32, #tpu.memory_space<vmem>>, vector<17x32xf32>
    %17 = vector.shape_cast %16 : vector<17x32xf32> to vector<1x17x32xf32>
    %18 = vector.broadcast %17 : vector<1x17x32xf32> to vector<2x17x32xf32>
    %19 = arith.addf %15, %18 : vector<2x17x32xf32>
    %c0_9 = arith.constant 0 : index
    %c0_10 = arith.constant 0 : index
    %c0_11 = arith.constant 0 : index
    %20 = vector.load %arg5[%c0_9, %c0_10, %c0_11] : memref<2x17x32xf32, #tpu.memory_space<vmem>>, vector<2x17x32xf32>
    tpu.vector_store %arg5[%c0_9, %c0_10, %c0_11], %19 {strides = array<i32>} : memref<2x17x32xf32, #tpu.memory_space<vmem>>, vector<2x17x32xf32>,
    return
  }
  func.func @transform_0(%arg0: i32) -> (i32, i32, i32) {
    %c0_i32 = arith.constant 0 : i32
    %c0_i32_0 = arith.constant 0 : i32
    %c0_i32_1 = arith.constant 0 : i32
    %c0_i32_2 = arith.constant 0 : i32
    return %c0_i32, %c0_i32_0, %c0_i32_1 : i32, i32, i32
  }
  func.func @transform_1(%arg0: i32) -> (i32, i32) {
    %c0_i32 = arith.constant 0 : i32
    %c0_i32_0 = arith.constant 0 : i32
    %c0_i32_1 = arith.constant 0 : i32
    return %c0_i32, %c0_i32_0 : i32, i32
  }
  func.func @transform_2(%arg0: i32) -> (i32, i32) {
    %c0_i32 = arith.constant 0 : i32
    %c0_i32_0 = arith.constant 0 : i32
    %c0_i32_1 = arith.constant 0 : i32
    return %c0_i32, %c0_i32_0 : i32, i32
  }
  func.func @transform_3(%arg0: i32) -> (i32, i32) {
    %c0_i32 = arith.constant 0 : i32
    %c0_i32_0 = arith.constant 0 : i32
    %c0_i32_1 = arith.constant 0 : i32
    return %c0_i32, %c0_i32_0 : i32, i32
  }
  func.func @transform_4(%arg0: i32) -> (i32, i32, i32) {
    %c0_i32 = arith.constant 0 : i32
    %c0_i32_0 = arith.constant 0 : i32
    %c0_i32_1 = arith.constant 0 : i32
    %c0_i32_2 = arith.constant 0 : i32
    return %c0_i32, %c0_i32_0, %c0_i32_1 : i32, i32, i32
  }
}

</mosaic_0001>

<bundles_post_ra>
// kernel: tpu_custom_call.1
= control target key start
LH: loop header
LB: loop body
LE: loop exit
PB: predicated region body
PF: predicated region fallthrough
CT: control target
= control target key end

     0   :  { %v334_v0 = vmov 0.0|0.0   ;;  %vm335_vm0 = vmmov 0   ;;  %v336_v6 = vmov 0.0   ;;  %vm46_vm1 = vcmask 392192   ;;  %s434_s1 = inlined_call_operand.vmem [shape: f32[48,32], index: 1, kind: input, shape index: {}]   ;;  %s435_s0 = inlined_call_operand.vmem [shape: f32[2,17,48], index: 0, kind: input, shape index: {}]   ;;  %s436_s2 = inlined_call_operand.vmem [shape: f32[1,32], index: 2, kind: input, shape index: {}]   ;;  %s437_s3 = inlined_call_operand.vmem [shape: f32[17,32], index: 3, kind: input, shape index: {}]   ;;  %s438_s4 = inlined_call_operand.vmem [shape: f32[2,17,32], index: 4, kind: output, shape index: {}]  }
   0x1   :  { %313 = vmatprep.subr.bf16.mxu0 %v334_v0  ;;  %322 = vmatprep.subr.bf16.mxu1 %v334_v0  ;;  %v17_v1 = vld [vmem:[%s434_s1] sm:$0xff]  ;;  %v18_v2 = vld [vmem:[%s434_s1 + $0x8] sm:$0xff]  ;;  %v19_v3 = vld [vmem:[%s434_s1 + $0x10] sm:$0xff]  ;;  %v29_v17 = vlaneseq  ;;  %vm234_vm3 = vcmask 261120   ;;  %vm237_vm4 = vcmask 253952  }
   0x2   :  { %v314_v4 = vpack.c.bf16 %v18_v2, %v17_v1  ;;  %v20_v5 = vld [vmem:[%s434_s1 + $0x18] sm:$0xff]  ;;  %283 = vmatprep.mubr.msk.f32.mxu0 %vm335_vm0, %v336_v6  ;;  %304 = vmatprep.mubr.msk.f32.mxu1 %vm335_vm0, %v336_v6  ;;  %v21_v8 = vld [vmem:[%s434_s1 + $0x20] sm:$0xff]  ;;  %v22_v9 = vld [vmem:[%s434_s1 + $0x28] sm:$0xff] }
   0x3   :  { %v317_v7 = vpack.c.bf16 %v20_v5, %v19_v3  ;;  %v320_v10 = vpack.c.bf16 %v22_v9, %v21_v8  ;;  %v23_v11 = vld [vmem:[%s435_s0] sm:$0xff]  ;;  %v26_v12 = vld [vmem:[%s435_s0 + $0x18] sm:$0xff]  ;;  %v24_v13 = vld [vmem:[%s435_s0 + $0x8] sm:$0xff]  ;;  %v30_v18 = vshrl.u32 %v29_v17, 7 }
   0x4   :  { %315 = vmatpush3.bf16.msra.mxu0 %v314_v4  ;;  %324 = vmatpush3.bf16.msra.mxu1 %v314_v4  ;;  %v27_v14 = vld [vmem:[%s435_s0 + $0x20] sm:$0xff]  ;;  %v25_v15 = vld [vmem:[%s435_s0 + $0x10] sm:$0x1]  ;;  %v28_v16 = vld [vmem:[%s435_s0 + $0x28] sm:$0x1] }
   0x5   :  { %316 = vmatprep.subr.bf16.mxu0 %v334_v0  ;;  %325 = vmatprep.subr.bf16.mxu1 %v334_v0  ;;  %v246_v19 = vld [vmem:[%s436_s2] ss:$0 sm:$0xff]  ;;  %vm40_vm2 = vcmp.eq.s32.totalorder %v30_v18, 0  ;;  %v226_v28 = vld [vmem:[%s437_s3 + $0x8] sm:$0xff]  ;;  %v227_v37 = vld [vmem:[%s437_s3 + $0x10] sm:$0x1] }
   0x6   :  { %v43_v20 = vsel %vm40_vm2, %v246_v19, 0.0  ;;  %v225_v22 = vld [vmem:[%s437_s3] sm:$0xff] }
   0x8   :  { %318 = vmatpush3.bf16.msra.mxu0 %v317_v7  ;;  %327 = vmatpush3.bf16.msra.mxu1 %v317_v7 }
   0x9   :  { %319 = vmatprep.subr.bf16.mxu0 %v334_v0  ;;  %328 = vmatprep.subr.bf16.mxu1 %v334_v0 }
   0xc   :  { %321 = vmatpush3.bf16.msra.mxu0 %v320_v10  ;;  %330 = vmatpush3.bf16.msra.mxu1 %v320_v10 }
   0xf   :  { %284 = vmatmul.mubr.msk.f32.vlgmr.msra.gmra.mrb[0].mxu0 %vm46_vm1, %v23_v11  ;;  %305 = vmatmul.mubr.msk.f32.vlgmr.msra.gmra.mrb[0].mxu1 %vm46_vm1, %v26_v12 }
  0x10   :  { %286 = vmatprep.mubr.msk.f32.mxu0 %vm335_vm0, %v336_v6  ;;  %307 = vmatprep.mubr.msk.f32.mxu1 %vm335_vm0, %v336_v6 }
  0x13   :  { %287 = vmatmul.mubr.msk.f32.gmra.mrb[2].mxu0 %vm46_vm1, %v24_v13  ;;  %308 = vmatmul.mubr.msk.f32.gmra.mrb[2].mxu1 %vm46_vm1, %v27_v14 }
  0x14   :  { %289 = vmatprep.mubr.msk.f32.mxu0 %vm335_vm0, %v336_v6  ;;  %310 = vmatprep.mubr.msk.f32.mxu1 %vm335_vm0, %v336_v6 }
  0x17   :  { %290 = vmatmul.mubr.msk.f32.gmra.mrb[4].mxu0 %vm46_vm1, %v25_v15  ;;  %311 = vmatmul.mubr.msk.f32.gmra.mrb[4].mxu1 %vm46_vm1, %v28_v16 }
  0xe2   :  { %v122_v21 = vpop.f32.mrb[0].mxu0  ;;  %v211_v23 = vpop.f32.mrb[0].mxu1 }
  0xe3   :  { %v123_v24 = vadd.f32 %v122_v21, %v43_v20  ;;  %v212_v25 = vadd.f32 %v211_v23, %v43_v20  ;;  %v285_v26 = vpop.f32.mrb[1].mxu0  ;;  %v306_v27 = vpop.f32.mrb[1].mxu1 }
  0xe5   :  { %v228_v29 = vadd.f32 %v225_v22, %v123_v24  ;;  %v231_v30 = vadd.f32 %v225_v22, %v212_v25 }
  0xe6   :  { %v127_v31 = vpop.f32.mrb[2].mxu0  ;;  %v216_v32 = vpop.f32.mrb[2].mxu1 }
  0xe7   :  { %235 = vst.msk [vmem:[%s438_s4] sm:$0xff] %vm234_vm3, %v228_v29  ;;  %239 = vst.msk [vmem:[%s438_s4 + $0x18] sm:$0xff] %vm234_vm3, %v231_v30  ;;  %v229_v33 = vadd.f32 %v226_v28, %v127_v31  ;;  %v232_v34 = vadd.f32 %v226_v28, %v216_v32  ;;  %v288_v35 = vpop.f32.mrb[3].mxu0  ;;  %v309_v36 = vpop.f32.mrb[3].mxu1 }
  0xe9   :  { %236 = vst.msk [vmem:[%s438_s4 + $0x8] sm:$0xff] %vm234_vm3, %v229_v33  ;;  %240 = vst.msk [vmem:[%s438_s4 + $0x20] sm:$0xff] %vm234_vm3, %v232_v34 }
  0xea   :  { %v132_v38 = vpop.f32.mrb[4].mxu0  ;;  %v221_v39 = vpop.f32.mrb[4].mxu1 }
  0xeb   :  { %v230_v40 = vadd.f32 %v227_v37, %v132_v38  ;;  %v233_v41 = vadd.f32 %v227_v37, %v221_v39  ;;  %v291_v42 = vpop.f32.mrb[5].mxu0  ;;  %v312_v43 = vpop.f32.mrb[5].mxu1 }
  0xed   :  { %238 = vst.msk [vmem:[%s438_s4 + $0x10] sm:$0x1] %vm237_vm4, %v230_v40  ;;  %241 = vst.msk [vmem:[%s438_s4 + $0x28] sm:$0x1] %vm237_vm4, %v233_v41 }

</bundles_post_ra>
